<compile_context>
chip_gen: v5e
topology: v5e:2x2
jax: 0.10.0
libtpu: 0.0.40
codegen_flags: <defaults>
</compile_context>

<pallas_src>
import functools

import numpy as np
import jax
import jax.numpy as jnp
from jax.experimental import pallas as pl
from jax.experimental.pallas import tpu as pltpu

EPS = 1e-5            # PyTorch BatchNorm2d default eps
LANE = 128            # TPU lane width
_MIN_TM = 16          # bf16 minimum sublane tile
_MAX_TM = 512         # target M tile (rows)


# ---------------------------------------------------------------------------
# small helpers
# ---------------------------------------------------------------------------
def _round_up(x, m):
    return (x + m - 1) // m * m


def _pad2d(x, rows, cols):
    r, c = x.shape
    if r == rows and c == cols:
        return x
    return jnp.pad(x, ((0, rows - r), (0, cols - c)))


@functools.lru_cache(maxsize=None)
def _vmem_budget():
    """(tile budget, scoped vmem limit) per TPU generation.

    v7x has 64 MiB physical VMEM per TensorCore -> stay around 44/48 MiB;
    v5e / v6e have 128 MiB -> use ~88/100 MiB for bigger tiles / deeper
    pipelining.  Falls back to the conservative (v7x-safe) numbers if the
    hardware query fails.
    """
    phys = 64 * 1024 * 1024
    try:
        phys = int(getattr(pltpu.get_tpu_info(), "vmem_capacity_bytes", phys))
    except Exception:
        pass
    if phys <= 64 * 1024 * 1024:
        return 44 * 1024 * 1024, 48 * 1024 * 1024
    return 88 * 1024 * 1024, 100 * 1024 * 1024


def _pick_tile(M, per_row_bytes, fixed_bytes, budget):
    """Pick the M tile: multiple of 16, <= _MAX_TM, double-buffered tiles fit
    the VMEM budget, and the grid has >= 2 steps whenever M allows it (v7x
    shards the 'parallel' grid axis over its two TensorCores)."""
    tm = min(_MAX_TM, _round_up(M, _MIN_TM))
    if M > _MIN_TM and M <= tm:                  # would be a 1-step grid
        tm = _round_up(pl.cdiv(M, 2), _MIN_TM)
    while tm > _MIN_TM and fixed_bytes + 2 * tm * per_row_bytes > budget:
        tm = max(_MIN_TM, _round_up(tm // 2, _MIN_TM))
    if tm >= 256:                                # align with 256-row MXU passes
        tm = tm // 256 * 256
    return tm, _round_up(M, tm)


# ---------------------------------------------------------------------------
# Pallas kernels (bf16 MXU operands, f32 accumulation, fused epilogues)
# ---------------------------------------------------------------------------
def _matmul_prelu_kernel(a_ref, w_ref, slope_ref, o_ref):
    # conv1-as-matmul + PReLU epilogue (per output channel slope)
    y = jnp.dot(a_ref[...], w_ref[...], preferred_element_type=jnp.float32)
    o_ref[...] = jnp.where(y >= 0.0, y, slope_ref[...] * y).astype(o_ref.dtype)


def _matmul_bias_kernel(a_ref, w_ref, bias_ref, o_ref):
    # conv2 (+ conv1x1+BN shortcut fused in via K-concat); BN scales are
    # folded into the weight columns -> epilogue is a single broadcast add.
    y = jnp.dot(a_ref[...], w_ref[...], preferred_element_type=jnp.float32)
    o_ref[...] = (y + bias_ref[...]).astype(o_ref.dtype)


def _matmul_bias_add_kernel(a_ref, w_ref, bias_ref, add_ref, o_ref):
    # conv2 + folded BN2 + identity-shortcut residual (streamed as bf16).
    y = jnp.dot(a_ref[...], w_ref[...], preferred_element_type=jnp.float32)
    o_ref[...] = (y + bias_ref[...]
                  + add_ref[...].astype(jnp.float32)).astype(o_ref.dtype)


# ---------------------------------------------------------------------------
# generic M-tiled matmul pallas_call wrapper
# ---------------------------------------------------------------------------
def _run_matmul(kernel, a_bf16, w_bf16, bcast_ops, row_ops, out_dtype):
    """a: (M, Kp) bf16 patches, w: (Kp, Np) bf16 folded weights.
    bcast_ops: (1, Np) f32 per-channel operands; row_ops: (M, Np) per-row
    operands tiled like `a`.  K / N are already lane-padded by the caller."""
    M, Kp = a_bf16.shape
    Np = w_bf16.shape[1]
    out_bytes = np.dtype(out_dtype).itemsize
    budget, limit = _vmem_budget()

    per_row = (2 * Kp + out_bytes * Np
               + sum(r.dtype.itemsize * r.shape[1] for r in row_ops))
    fixed = 2 * (2 * Kp * Np + 4 * Np * len(bcast_ops))
    tm, Mp = _pick_tile(M, per_row, fixed, budget)

    if Mp != M:
        # Rare with the tile choices above; when it does happen XLA fuses the
        # pad into the im2col-concat producer (no standalone HBM pass).
        a_bf16 = jnp.pad(a_bf16, ((0, Mp - M), (0, 0)))
        row_ops = [jnp.pad(r, ((0, Mp - M), (0, 0))) for r in row_ops]

    # Weight / broadcast blocks have a constant index_map: Pallas only issues
    # a DMA when the block index changes, so they are fetched once.
    in_specs = [pl.BlockSpec((tm, Kp), lambda i: (i, 0)),
                pl.BlockSpec((Kp, Np), lambda i: (0, 0))]
    in_specs += [pl.BlockSpec((1, Np), lambda i: (0, 0)) for _ in bcast_ops]
    in_specs += [pl.BlockSpec((tm, r.shape[1]), lambda i: (i, 0))
                 for r in row_ops]

    bytes_accessed = (Mp * Kp * 2 + Kp * Np * 2 + Mp * Np * out_bytes
                      + sum(int(r.size) * r.dtype.itemsize for r in row_ops)
                      + 4 * Np * len(bcast_ops))

    out = pl.pallas_call(
        kernel,
        out_shape=jax.ShapeDtypeStruct((Mp, Np), out_dtype),
        grid=(Mp // tm,),
        in_specs=in_specs,
        out_specs=pl.BlockSpec((tm, Np), lambda i: (i, 0)),
        compiler_params=pltpu.CompilerParams(
            dimension_semantics=("parallel",),
            vmem_limit_bytes=limit),
        cost_estimate=pl.CostEstimate(
            flops=2 * Mp * Kp * Np,
            transcendentals=0,
            bytes_accessed=bytes_accessed),
    )(a_bf16, w_bf16, *bcast_ops, *row_ops)
    return out[:M] if Mp != M else out


# ---------------------------------------------------------------------------
# Plain-JAX glue: im2col, weight reshaping, BN folding
# ---------------------------------------------------------------------------
def im2col(x_nhwc, kh, kw, stride, pad, extra=(), k_pad_to=None):
    """Emit the (M, K) conv patch matrix in ONE bf16 materialization:
    kh*kw shifted taps ++ optional extra channel slabs (fused shortcut
    operand) ++ a zero slab that lane-pads K -> no separate padding pass."""
    N, H, W, _ = x_nhwc.shape
    xp = jnp.pad(x_nhwc, ((0, 0), (pad, pad), (pad, pad), (0, 0)))
    Ho = (H + 2 * pad - kh) // stride + 1
    Wo = (W + 2 * pad - kw) // stride + 1
    slabs = []
    for i in range(kh):
        for j in range(kw):
            slabs.append(
                xp[:, i: i + Ho * stride: stride, j: j + Wo * stride: stride, :])
    slabs.extend(extra)
    k = sum(s.shape[-1] for s in slabs)
    if k_pad_to is not None and k_pad_to > k:
        slabs.append(jnp.zeros((N, Ho, Wo, k_pad_to - k), jnp.bfloat16))
    patch = jnp.concatenate([s.astype(jnp.bfloat16) for s in slabs], axis=-1)
    return patch.reshape(N * Ho * Wo, patch.shape[-1]), Ho, Wo


def conv_weight_to_matrix(w_oikk, in_ch_padded=None):
    """PyTorch (O, I, kh, kw) weight -> (kh*kw*Ip, O) matmul weight whose row
    ordering matches im2col's [(i, j) outer, channel inner] layout; the input
    channel count can be zero-padded to match a lane-padded activation."""
    O, I, kh, kw = w_oikk.shape
    w = jnp.transpose(w_oikk, (2, 3, 1, 0))            # (kh, kw, I, O)
    if in_ch_padded is not None and in_ch_padded > I:
        w = jnp.pad(w, ((0, 0), (0, 0), (0, in_ch_padded - I), (0, 0)))
        I = in_ch_padded
    return w.reshape(kh * kw * I, O)


def fold_bn(bn_params):
    """(gamma, beta, running_mean, running_var) -> scale, shift of shape (1, C)."""
    gamma, beta, mean, var = bn_params
    scale = gamma / jnp.sqrt(var + EPS)
    shift = beta - mean * scale
    return scale.reshape(1, -1), shift.reshape(1, -1)


# ---------------------------------------------------------------------------
# bottleneck_IR forward (eval-mode BatchNorm, i.e. running statistics)
# ---------------------------------------------------------------------------
@functools.partial(jax.jit, static_argnames=("stride",))
def bottleneck_ir_forward(x_nchw, params, stride):
    x = jnp.transpose(x_nchw, (0, 2, 3, 1)).astype(jnp.float32)   # NCHW->NHWC
    N, H, W, Cin = x.shape
    depth = params["w1"].shape[0]
    Np = _round_up(depth, LANE)

    # --- res branch: BN1 -> conv3x3(s=1,p=1) -> PReLU -> conv3x3(s,p=1) -> BN2
    # BN1 is a per-channel affine applied before zero-padding; XLA fuses it
    # (plus the bf16 cast) into the im2col pad/slice/concat producer.
    s1, b1 = fold_bn(params["bn1"])
    xb = (x * s1 + b1).astype(jnp.bfloat16)

    # conv1 + PReLU: K lane-padded inside the concat; output channels stay
    # lane-padded (the padded columns are exact zeros) so the next im2col
    # consumes y1 directly with no slice/copy.
    K1 = _round_up(9 * Cin, LANE)
    a1, Ho1, Wo1 = im2col(xb, 3, 3, 1, 1, k_pad_to=K1)
    w1m = _pad2d(conv_weight_to_matrix(params["w1"]), K1, Np).astype(jnp.bfloat16)
    slope = _pad2d(params["prelu"].reshape(1, -1), 1, Np).astype(jnp.float32)
    y1 = _run_matmul(_matmul_prelu_kernel, a1, w1m, [slope], [], jnp.bfloat16)
    y1 = y1.reshape(N, Ho1, Wo1, Np)                   # bf16, lane-padded chans

    # conv2 + BN2: fold the BN scale into the weight columns, pre-sum shifts.
    s2, b2 = fold_bn(params["bn2"])
    w2m = conv_weight_to_matrix(params["w2"], in_ch_padded=Np) * s2  # (9*Np, depth)

    # --- shortcut branch (uses the ORIGINAL x, per the module)
    xs = x[:, ::stride, ::stride, :]                   # (N, Ho2, Wo2, Cin)

    if Cin == depth:
        # MaxPool2d(kernel=1, stride) == strided subsampling; residual is
        # streamed into the kernel as bf16 and upcast there.
        K2 = 9 * Np                                    # already a LANE multiple
        a2, Ho2, Wo2 = im2col(y1, 3, 3, stride, 1, k_pad_to=K2)
        w2p = _pad2d(w2m, K2, Np).astype(jnp.bfloat16)
        bias = _pad2d(b2, 1, Np).astype(jnp.float32)
        add = jnp.pad(xs, ((0, 0), (0, 0), (0, 0), (0, Np - Cin))
                      ).reshape(-1, Np).astype(jnp.bfloat16)
        out = _run_matmul(_matmul_bias_add_kernel, a2, w2p, [bias], [add],
                          jnp.float32)
    else:
        # Conv2d 1x1 (stride) + BatchNorm2d shortcut fused via K-concat:
        # A' = [conv2 patches | xs], W' = [w2*scale2 ; wsc*scalesc],
        # bias = shift2 + shift_sc  -> one long-K MXU dot, one add.
        ssc, bsc = fold_bn(params["bnsc"])
        wscm = conv_weight_to_matrix(params["wsc"]) * ssc            # (Cin, depth)
        K2 = _round_up(9 * Np + Cin, LANE)
        a2, Ho2, Wo2 = im2col(y1, 3, 3, stride, 1, extra=(xs,), k_pad_to=K2)
        wfull = _pad2d(jnp.concatenate([w2m, wscm], axis=0), K2, Np
                       ).astype(jnp.bfloat16)
        bias = _pad2d(b2 + bsc, 1, Np).astype(jnp.float32)
        out = _run_matmul(_matmul_bias_kernel, a2, wfull, [bias], [],
                          jnp.float32)

    out = out[:, :depth].reshape(N, Ho2, Wo2, depth)
    return jnp.transpose(out, (0, 3, 1, 2))            # NHWC -> NCHW


# ---------------------------------------------------------------------------
# Pure-JAX f32 reference (lax.conv) for a correctness check
# ---------------------------------------------------------------------------
def reference_forward(x_nchw, params, stride):
    x = jnp.transpose(x_nchw, (0, 2, 3, 1)).astype(jnp.float32)
    Cin = x.shape[-1]
    depth = params["w1"].shape[0]

    def bn(t, p):
        g, b, m, v = p
        return (t - m) / jnp.sqrt(v + EPS) * g + b

    def conv(t, w, s, p):
        wh = jnp.transpose(w, (2, 3, 1, 0))            # OIHW -> HWIO
        return jax.lax.conv_general_dilated(
            t, wh, (s, s), [(p, p), (p, p)],
            dimension_numbers=("NHWC", "HWIO", "NHWC"))

    r = bn(x, params["bn1"])
    r = conv(r, params["w1"], 1, 1)
    r = jnp.where(r >= 0.0, r, params["prelu"] * r)
    r = conv(r, params["w2"], stride, 1)
    r = bn(r, params["bn2"])

    if Cin == depth:
        sc = x[:, ::stride, ::stride, :]
    else:
        sc = bn(conv(x, params["wsc"], stride, 0), params["bnsc"])

    return jnp.transpose(r + sc, (0, 3, 1, 2))


# ---------------------------------------------------------------------------
# Deterministic parameter init
# ---------------------------------------------------------------------------
def init_params(key, in_channel, depth):
    ks = jax.random.split(key, 16)

    def bn_init(k0, k1, k2, k3, c):
        gamma = jax.random.uniform(k0, (c,), jnp.float32, 0.5, 1.5)
        beta = 0.1 * jax.random.normal(k1, (c,), jnp.float32)
        mean = 0.1 * jax.random.normal(k2, (c,), jnp.float32)
        var = jax.random.uniform(k3, (c,), jnp.float32, 0.5, 1.5)
        return (gamma, beta, mean, var)

    params = {
        "w1": 0.1 * jax.random.normal(ks[0], (depth, in_channel, 3, 3), jnp.float32),
        "w2": 0.1 * jax.random.normal(ks[1], (depth, depth, 3, 3), jnp.float32),
        "prelu": jax.random.uniform(ks[2], (depth,), jnp.float32, 0.1, 0.4),
        "bn1": bn_init(ks[3], ks[4], ks[5], ks[6], in_channel),
        "bn2": bn_init(ks[7], ks[8], ks[9], ks[10], depth),
    }
    if in_channel != depth:
        params["wsc"] = 0.1 * jax.random.normal(
            ks[11], (depth, in_channel, 1, 1), jnp.float32)
        params["bnsc"] = bn_init(ks[12], ks[13], ks[14], ks[15], depth)
    return params


if __name__ == "__main__":
    key = jax.random.PRNGKey(0)
    k_x, k_p, k_x2, k_p2 = jax.random.split(key, 4)

    # bf16 MXU operands -> compare against the f32 reference at bf16-level tol
    TOL = 5e-2

    # config 1: in_channel != depth -> fused conv1x1+BN shortcut (K-concat)
    batch, in_channel, depth, spatial, stride = 2, 4, 8, 16, 2
    x = jax.random.normal(k_x, (batch, in_channel, spatial, spatial), jnp.float32)
    params = init_params(k_p, in_channel, depth)
    out = jax.block_until_ready(bottleneck_ir_forward(x, params, stride))
    ref = reference_forward(x, params, stride)
    assert out.shape == ref.shape == (batch, depth, spatial // stride, spatial // stride)
    assert jnp.allclose(out, ref, atol=TOL, rtol=TOL), "mismatch vs reference (conv shortcut)"

    # config 2: in_channel == depth -> identity (MaxPool2d(1, stride)) shortcut
    in_channel2 = depth2 = 8
    x2 = jax.random.normal(k_x2, (batch, in_channel2, spatial, spatial), jnp.float32)
    params2 = init_params(k_p2, in_channel2, depth2)
    out2 = jax.block_until_ready(bottleneck_ir_forward(x2, params2, stride))
    ref2 = reference_forward(x2, params2, stride)
    assert out2.shape == ref2.shape == (batch, depth2, spatial // stride, spatial // stride)
    assert jnp.allclose(out2, ref2, atol=TOL, rtol=TOL), "mismatch vs reference (identity shortcut)"

    print("KERNEL_OK")
</pallas_src>

<mosaic_0001>
module attributes {stable_mosaic.version = 11 : i64} {
  func.func @_matmul_prelu_kernel(%arg0: i32, %arg1: memref<256x128xbf16, #tpu.memory_space<vmem>>, %arg2: memref<128x128xbf16, #tpu.memory_space<vmem>>, %arg3: memref<1x128xf32, #tpu.memory_space<vmem>>, %arg4: memref<256x128xbf16, #tpu.memory_space<vmem>>) attributes {dimension_semantics = [#tpu.dimension_semantics<parallel>], iteration_bounds = array<i64: 2>, scalar_prefetch = 0 : i64, scratch_operands = 0 : i64, tpu.core_type = #tpu.core_type<tc>, window_params = [{transform_indices = @transform_0, window_bounds = array<i64: 256, 128>}, {pipeline_mode = #tpu.pipeline_mode<synchronous>, transform_indices = @transform_1, window_bounds = array<i64: 128, 128>}, {pipeline_mode = #tpu.pipeline_mode<synchronous>, transform_indices = @transform_2, window_bounds = array<i64: 1, 128>}, {transform_indices = @transform_3, window_bounds = array<i64: 256, 128>}]} {
    %c0 = arith.constant 0 : index
    %c0_0 = arith.constant 0 : index
    %0 = vector.load %arg1[%c0, %c0_0] : memref<256x128xbf16, #tpu.memory_space<vmem>>, vector<256x128xbf16>
    %c0_1 = arith.constant 0 : index
    %c0_2 = arith.constant 0 : index
    %1 = vector.load %arg2[%c0_1, %c0_2] : memref<128x128xbf16, #tpu.memory_space<vmem>>, vector<128x128xbf16>
    %cst = arith.constant dense<0.000000e+00> : vector<256x128xf32>
    %2 = tpu.matmul %0, %1, %cst {dimension_numbers = #tpu.dot_dimension_numbers<[1], [0], [0], [1], [0, 0, 1, 1], [], []>} : vector<256x128xbf16>, vector<128x128xbf16>, vector<256x128xf32> -> vector<256x128xf32>
    %cst_3 = arith.constant 0.000000e+00 : f32
    %3 = vector.broadcast %cst_3 : f32 to vector<256x128xf32>
    %4 = arith.cmpf oge, %2, %3 : vector<256x128xf32>
    %c0_4 = arith.constant 0 : index
    %c0_5 = arith.constant 0 : index
    %5 = vector.load %arg3[%c0_4, %c0_5] : memref<1x128xf32, #tpu.memory_space<vmem>>, vector<1x128xf32>
    %6 = vector.broadcast %5 : vector<1x128xf32> to vector<256x128xf32>
    %7 = arith.mulf %6, %2 : vector<256x128xf32>
    %8 = arith.select %4, %2, %7 : vector<256x128xi1>, vector<256x128xf32>
    %9 = arith.truncf %8 : vector<256x128xf32> to vector<256x128xbf16>
    %c0_6 = arith.constant 0 : index
    %c0_7 = arith.constant 0 : index
    %10 = vector.load %arg4[%c0_6, %c0_7] : memref<256x128xbf16, #tpu.memory_space<vmem>>, vector<256x128xbf16>
    tpu.vector_store %arg4[%c0_6, %c0_7], %9 {strides = array<i32>} : memref<256x128xbf16, #tpu.memory_space<vmem>>, vector<256x128xbf16>,
    return
  }
  func.func @transform_0(%arg0: i32) -> (i32, i32) {
    %c0_i32 = arith.constant 0 : i32
    %c0_i32_0 = arith.constant 0 : i32
    return %arg0, %c0_i32 : i32, i32
  }
  func.func @transform_1(%arg0: i32) -> (i32, i32) {
    %c0_i32 = arith.constant 0 : i32
    %c0_i32_0 = arith.constant 0 : i32
    %c0_i32_1 = arith.constant 0 : i32
    return %c0_i32, %c0_i32_0 : i32, i32
  }
  func.func @transform_2(%arg0: i32) -> (i32, i32) {
    %c0_i32 = arith.constant 0 : i32
    %c0_i32_0 = arith.constant 0 : i32
    %c0_i32_1 = arith.constant 0 : i32
    return %c0_i32, %c0_i32_0 : i32, i32
  }
  func.func @transform_3(%arg0: i32) -> (i32, i32) {
    %c0_i32 = arith.constant 0 : i32
    %c0_i32_0 = arith.constant 0 : i32
    return %arg0, %c0_i32 : i32, i32
  }
}

module attributes {stable_mosaic.version = 11 : i64} {
  func.func @_matmul_bias_kernel(%arg0: i32, %arg1: memref<64x1280xbf16, #tpu.memory_space<vmem>>, %arg2: memref<1280x128xbf16, #tpu.memory_space<vmem>>, %arg3: memref<1x128xf32, #tpu.memory_space<vmem>>, %arg4: memref<64x128xf32, #tpu.memory_space<vmem>>) attributes {dimension_semantics = [#tpu.dimension_semantics<parallel>], iteration_bounds = array<i64: 2>, scalar_prefetch = 0 : i64, scratch_operands = 0 : i64, tpu.core_type = #tpu.core_type<tc>, window_params = [{transform_indices = @transform_0, window_bounds = array<i64: 64, 1280>}, {pipeline_mode = #tpu.pipeline_mode<synchronous>, transform_indices = @transform_1, window_bounds = array<i64: 1280, 128>}, {pipeline_mode = #tpu.pipeline_mode<synchronous>, transform_indices = @transform_2, window_bounds = array<i64: 1, 128>}, {transform_indices = @transform_3, window_bounds = array<i64: 64, 128>}]} {
    %c0 = arith.constant 0 : index
    %c0_0 = arith.constant 0 : index
    %0 = vector.load %arg1[%c0, %c0_0] : memref<64x1280xbf16, #tpu.memory_space<vmem>>, vector<64x1280xbf16>
    %c0_1 = arith.constant 0 : index
    %c0_2 = arith.constant 0 : index
    %1 = vector.load %arg2[%c0_1, %c0_2] : memref<1280x128xbf16, #tpu.memory_space<vmem>>, vector<1280x128xbf16>
    %cst = arith.constant dense<0.000000e+00> : vector<64x128xf32>
    %2 = tpu.matmul %0, %1, %cst {dimension_numbers = #tpu.dot_dimension_numbers<[1], [0], [0], [1], [0, 0, 1, 1], [], []>} : vector<64x1280xbf16>, vector<1280x128xbf16>, vector<64x128xf32> -> vector<64x128xf32>
    %c0_3 = arith.constant 0 : index
    %c0_4 = arith.constant 0 : index
    %3 = vector.load %arg3[%c0_3, %c0_4] : memref<1x128xf32, #tpu.memory_space<vmem>>, vector<1x128xf32>
    %4 = vector.broadcast %3 : vector<1x128xf32> to vector<64x128xf32>
    %5 = arith.addf %2, %4 : vector<64x128xf32>
    %c0_5 = arith.constant 0 : index
    %c0_6 = arith.constant 0 : index
    %6 = vector.load %arg4[%c0_5, %c0_6] : memref<64x128xf32, #tpu.memory_space<vmem>>, vector<64x128xf32>
    tpu.vector_store %arg4[%c0_5, %c0_6], %5 {strides = array<i32>} : memref<64x128xf32, #tpu.memory_space<vmem>>, vector<64x128xf32>,
    return
  }
  func.func @transform_0(%arg0: i32) -> (i32, i32) {
    %c0_i32 = arith.constant 0 : i32
    %c0_i32_0 = arith.constant 0 : i32
    return %arg0, %c0_i32 : i32, i32
  }
  func.func @transform_1(%arg0: i32) -> (i32, i32) {
    %c0_i32 = arith.constant 0 : i32
    %c0_i32_0 = arith.constant 0 : i32
    %c0_i32_1 = arith.constant 0 : i32
    return %c0_i32, %c0_i32_0 : i32, i32
  }
  func.func @transform_2(%arg0: i32) -> (i32, i32) {
    %c0_i32 = arith.constant 0 : i32
    %c0_i32_0 = arith.constant 0 : i32
    %c0_i32_1 = arith.constant 0 : i32
    return %c0_i32, %c0_i32_0 : i32, i32
  }
  func.func @transform_3(%arg0: i32) -> (i32, i32) {
    %c0_i32 = arith.constant 0 : i32
    %c0_i32_0 = arith.constant 0 : i32
    return %arg0, %c0_i32 : i32, i32
  }
}

</mosaic_0001>

<bundles_post_ra>
// kernel: bottleneck_ir_forward.2
= control target key start
LH: loop header
LB: loop body
LE: loop exit
PB: predicated region body
PF: predicated region fallthrough
CT: control target
= control target key end

     0   :  { %s962_s12 = smov 0   ;;  %s1083_s0 = inlined_call_operand.vmem [shape: bf16[512,128], index: 0, kind: input, shape index: {}]   ;;  %s1084_s1 = inlined_call_operand.vmem [shape: bf16[128,128], index: 1, kind: input, shape index: {}]   ;;  %s1085_s2 = inlined_call_operand.vmem [shape: f32[1,128], index: 2, kind: input, shape index: {}]   ;;  %s1086_s3 = inlined_call_operand.vmem [shape: bf16[512,128], index: 3, kind: output, shape index: {}]  }
   0x1 LB: > { %s675_s13 = sadd.s32 4294967295, %s940_s12   ;;  %p679_p0 = scmp.ge.s32.totalorder %s940_s12, 1  ;;  %s940_s12 = sphi %s962_s12, %s13_s12  }
   0x2   : > { %p138_p1 = scmp.lt.s32.totalorder %s940_s12, 3 }
   0x4   : > { %p139_p2 = pnand %p679_p0, %p138_p1 }
   0x5   : > { %s680_s22 = sshll.u32 (!%p139_p2), %s675_s13, 5 }
   0x6   : > { %142 = sbr.rel (%p139_p2) target bundleno = 239 (0xef), region = 32  ;;  %p163_p3 = scmp.lt.s32.totalorder (!%p139_p2), %s680_s22, 63 }
   0xb   : > { %v805_v0 = vld [vmem:[%s1084_s1 + $0x38] sm:$0xff]  ;;  %v804_v1 = vld [vmem:[%s1084_s1 + $0x30] sm:$0xff]  ;;  %v803_v2 = vld [vmem:[%s1084_s1 + $0x28] sm:$0xff]  ;;  %s1088_s22 = smov (!%p163_p3, %s680_s22), 63 }
   0xc   : > { %366 = vmatpush.bf16.msra.mxu0 %v805_v0  ;;  %901 = vmatpush.bf16.msra.mxu1 %v805_v0  ;;  %v802_v3 = vld [vmem:[%s1084_s1 + $0x20] sm:$0xff]  ;;  %v801_v4 = vld [vmem:[%s1084_s1 + $0x18] sm:$0xff]  ;;  %v800_v5 = vld [vmem:[%s1084_s1 + $0x10] sm:$0xff]  ;;  %s681_s29 = sshll.u32 %s1088_s22, 2 }
   0xd   : > { %902 = vmatpush.bf16.msra.mxu2 %v805_v0  ;;  %903 = vmatpush.bf16.msra.mxu3 %v805_v0  ;;  %v799_v6 = vld [vmem:[%s1084_s1 + $0x8] sm:$0xff]  ;;  %v798_v7 = vld [vmem:[%s1084_s1] sm:$0xff]  ;;  %s1002_s7 = scalar_lea.vmem %s1083_s0, %s681_s29  ;;  %s1034_s13 = scalar_lea.vmem %s1086_s3, %s681_s29 }
   0xe   : > { %v782_v8 = vld [vmem:[%s1002_s7] sm:$0xff]  ;;  %v783_v12 = vld [vmem:[%s1002_s7 + $0x8] sm:$0xff]  ;;  %v784_v16 = vld [vmem:[%s1002_s7 + $0x10] sm:$0xff] }
   0xf   : > { %v786_v9 = vld [vmem:[%s1002_s7 + $0x20] sm:$0xff]  ;;  %v787_v13 = vld [vmem:[%s1002_s7 + $0x28] sm:$0xff]  ;;  %v788_v17 = vld [vmem:[%s1002_s7 + $0x30] sm:$0xff] }
  0x10   : > { %367 = vmatpush.bf16.msra.mxu0 %v804_v1  ;;  %904 = vmatpush.bf16.msra.mxu1 %v804_v1  ;;  %v790_v10 = vld [vmem:[%s1002_s7 + $0x40] sm:$0xff]  ;;  %v791_v14 = vld [vmem:[%s1002_s7 + $0x48] sm:$0xff]  ;;  %v792_v18 = vld [vmem:[%s1002_s7 + $0x50] sm:$0xff] }
  0x11   : > { %905 = vmatpush.bf16.msra.mxu2 %v804_v1  ;;  %906 = vmatpush.bf16.msra.mxu3 %v804_v1  ;;  %v794_v11 = vld [vmem:[%s1002_s7 + $0x60] sm:$0xff]  ;;  %v795_v15 = vld [vmem:[%s1002_s7 + $0x68] sm:$0xff]  ;;  %v796_v19 = vld [vmem:[%s1002_s7 + $0x70] sm:$0xff] }
  0x12   : > { %v785_v20 = vld [vmem:[%s1002_s7 + $0x18] sm:$0xff]  ;;  %v1023_v26 = vld [vmem:[%s1085_s2] ss:$0 sm:$0xff] }
  0x13   : > { %v789_v21 = vld [vmem:[%s1002_s7 + $0x38] sm:$0xff] }
  0x14   : > { %368 = vmatpush.bf16.msra.mxu0 %v803_v2  ;;  %907 = vmatpush.bf16.msra.mxu1 %v803_v2  ;;  %v793_v22 = vld [vmem:[%s1002_s7 + $0x58] sm:$0xff] }
  0x15   : > { %908 = vmatpush.bf16.msra.mxu2 %v803_v2  ;;  %909 = vmatpush.bf16.msra.mxu3 %v803_v2  ;;  %v797_v23 = vld [vmem:[%s1002_s7 + $0x78] sm:$0xff] }
  0x18   : > { %369 = vmatpush.bf16.msra.mxu0 %v802_v3  ;;  %910 = vmatpush.bf16.msra.mxu1 %v802_v3 }
  0x19   : > { %911 = vmatpush.bf16.msra.mxu2 %v802_v3  ;;  %912 = vmatpush.bf16.msra.mxu3 %v802_v3 }
  0x1c   : > { %370 = vmatpush.bf16.msra.mxu0 %v801_v4  ;;  %913 = vmatpush.bf16.msra.mxu1 %v801_v4 }
  0x1d   : > { %914 = vmatpush.bf16.msra.mxu2 %v801_v4  ;;  %915 = vmatpush.bf16.msra.mxu3 %v801_v4 }
  0x20   : > { %371 = vmatpush.bf16.msra.mxu0 %v800_v5  ;;  %916 = vmatpush.bf16.msra.mxu1 %v800_v5 }
  0x21   : > { %917 = vmatpush.bf16.msra.mxu2 %v800_v5  ;;  %918 = vmatpush.bf16.msra.mxu3 %v800_v5 }
  0x24   : > { %372 = vmatpush.bf16.msra.mxu0 %v799_v6  ;;  %919 = vmatpush.bf16.msra.mxu1 %v799_v6 }
  0x25   : > { %920 = vmatpush.bf16.msra.mxu2 %v799_v6  ;;  %921 = vmatpush.bf16.msra.mxu3 %v799_v6 }
  0x28   : > { %373 = vmatpush.bf16.msra.mxu0 %v798_v7  ;;  %922 = vmatpush.bf16.msra.mxu1 %v798_v7 }
  0x29   : > { %923 = vmatpush.bf16.msra.mxu2 %v798_v7  ;;  %924 = vmatpush.bf16.msra.mxu3 %v798_v7 }
  0x2b   : > { %374 = vmatmul.bf16.vlgmr.msra.gmra.mxu0 %v782_v8  ;;  %394 = vmatmul.bf16.vlgmr.msra.gmra.mxu1 %v786_v9 }
  0x2c   : > { %414 = vmatmul.bf16.vlgmr.msra.gmra.mxu2 %v790_v10  ;;  %434 = vmatmul.bf16.vlgmr.msra.gmra.mxu3 %v794_v11 }
  0x3b   : > { %379 = vmatmul.bf16.gmra.mxu0 %v783_v12  ;;  %399 = vmatmul.bf16.gmra.mxu1 %v787_v13 }
  0x3c   : > { %419 = vmatmul.bf16.gmra.mxu2 %v791_v14  ;;  %439 = vmatmul.bf16.gmra.mxu3 %v795_v15 }
  0x4b   : > { %384 = vmatmul.bf16.gmra.mxu0 %v784_v16  ;;  %404 = vmatmul.bf16.gmra.mxu1 %v788_v17 }
  0x4c   : > { %424 = vmatmul.bf16.gmra.mxu2 %v792_v18  ;;  %444 = vmatmul.bf16.gmra.mxu3 %v796_v19 }
  0x5b   : > { %389 = vmatmul.bf16.gmra.mxu0 %v785_v20  ;;  %409 = vmatmul.bf16.gmra.mxu1 %v789_v21 }
  0x5c   : > { %429 = vmatmul.bf16.gmra.mxu2 %v793_v22  ;;  %449 = vmatmul.bf16.gmra.mxu3 %v797_v23 }
  0xa8   : > { %v375_v24 = vpop.f32.mrf.mxu0  ;;  %v395_v25 = vpop.f32.mrf.mxu1 }
  0xa9   : > { %v491_v27 = vmul.f32 %v1023_v26, %v375_v24  ;;  %v499_v28 = vmul.f32 %v1023_v26, %v395_v25  ;;  %vm455_vm0 = vcmp.ge.f32.partialorder %v375_v24, 0.0  ;;  %vm463_vm1 = vcmp.ge.f32.partialorder %v395_v25, 0.0 }
  0xab   : > { %v523_v35 = vsel %vm455_vm0, %v375_v24, %v491_v27  ;;  %v531_v36 = vsel %vm463_vm1, %v395_v25, %v499_v28 }
  0xaf   : > { %v415_v29 = vpop.f32.mrf.mxu2  ;;  %v435_v30 = vpop.f32.mrf.mxu3 }
  0xb0   : > { %v377_v31 = vpop.f32.mrf.mxu0  ;;  %v397_v32 = vpop.f32.mrf.mxu1  ;;  %v507_v41 = vmul.f32 %v1023_v26, %v415_v29  ;;  %v515_v42 = vmul.f32 %v1023_v26, %v435_v30  ;;  %vm471_vm4 = vcmp.ge.f32.partialorder %v415_v29, 0.0  ;;  %vm479_vm5 = vcmp.ge.f32.partialorder %v435_v30, 0.0 }
  0xb1   : > { %vm456_vm2 = vcmp.ge.f32.partialorder %v377_v31, 0.0  ;;  %v492_v33 = vmul.f32 %v1023_v26, %v377_v31  ;;  %vm464_vm3 = vcmp.ge.f32.partialorder %v397_v32, 0.0  ;;  %v500_v34 = vmul.f32 %v1023_v26, %v397_v32 }
  0xb2   : > { %v539_v49 = vsel %vm471_vm4, %v415_v29, %v507_v41  ;;  %v547_v50 = vsel %vm479_vm5, %v435_v30, %v515_v42 }
  0xb3   : > { %v524_v37 = vsel %vm456_vm2, %v377_v31, %v492_v33  ;;  %v532_v38 = vsel %vm464_vm3, %v397_v32, %v500_v34 }
  0xb4   : > { %v809_v39 = vpack.c.bf16 %v524_v37, %v523_v35  ;;  %v829_v40 = vpack.c.bf16 %v532_v38, %v531_v36 }
  0xb6   : > { %810 = vst [vmem:[%s1034_s13] sm:$0xff] %v809_v39  }
  0xb7   : > { %889 = vst [vmem:[%s1034_s13 + $0x20] sm:$0xff] %v829_v40   ;;  %v417_v43 = vpop.f32.mrf.mxu2  ;;  %v437_v44 = vpop.f32.mrf.mxu3 }
  0xb8   : > { %vm472_vm6 = vcmp.ge.f32.partialorder %v417_v43, 0.0  ;;  %v508_v45 = vmul.f32 %v1023_v26, %v417_v43  ;;  %vm480_vm7 = vcmp.ge.f32.partialorder %v437_v44, 0.0  ;;  %v516_v46 = vmul.f32 %v1023_v26, %v437_v44  ;;  %v380_v47 = vpop.f32.mrf.mxu0  ;;  %v400_v48 = vpop.f32.mrf.mxu1 }
  0xb9   : > { %v493_v55 = vmul.f32 %v1023_v26, %v380_v47  ;;  %v501_v56 = vmul.f32 %v1023_v26, %v400_v48  ;;  %vm457_vm8 = vcmp.ge.f32.partialorder %v380_v47, 0.0  ;;  %vm465_vm9 = vcmp.ge.f32.partialorder %v400_v48, 0.0 }
  0xba   : > { %v540_v51 = vsel %vm472_vm6, %v417_v43, %v508_v45  ;;  %v548_v52 = vsel %vm480_vm7, %v437_v44, %v516_v46 }
  0xbb   : > { %v849_v53 = vpack.c.bf16 %v540_v51, %v539_v49  ;;  %v869_v54 = vpack.c.bf16 %v548_v52, %v547_v50  ;;  %v525_v63 = vsel %vm457_vm8, %v380_v47, %v493_v55  ;;  %v533_v0 = vsel %vm465_vm9, %v400_v48, %v501_v56 }
  0xbd   : > { %893 = vst [vmem:[%s1034_s13 + $0x40] sm:$0xff] %v849_v53  }
  0xbe   : > { %897 = vst [vmem:[%s1034_s13 + $0x60] sm:$0xff] %v869_v54  }
  0xbf   : > { %v420_v57 = vpop.f32.mrf.mxu2  ;;  %v440_v58 = vpop.f32.mrf.mxu3 }
  0xc0   : > { %v382_v59 = vpop.f32.mrf.mxu0  ;;  %v402_v60 = vpop.f32.mrf.mxu1  ;;  %v509_v5 = vmul.f32 %v1023_v26, %v420_v57  ;;  %v517_v6 = vmul.f32 %v1023_v26, %v440_v58  ;;  %vm473_vm12 = vcmp.ge.f32.partialorder %v420_v57, 0.0  ;;  %vm481_vm13 = vcmp.ge.f32.partialorder %v440_v58, 0.0 }
  0xc1   : > { %vm458_vm10 = vcmp.ge.f32.partialorder %v382_v59, 0.0  ;;  %v494_v61 = vmul.f32 %v1023_v26, %v382_v59  ;;  %vm466_vm11 = vcmp.ge.f32.partialorder %v402_v60, 0.0  ;;  %v502_v62 = vmul.f32 %v1023_v26, %v402_v60 }
  0xc2   : > { %v541_v13 = vsel %vm473_vm12, %v420_v57, %v509_v5  ;;  %v549_v14 = vsel %vm481_vm13, %v440_v58, %v517_v6 }
  0xc3   : > { %v526_v1 = vsel %vm458_vm10, %v382_v59, %v494_v61  ;;  %v534_v2 = vsel %vm466_vm11, %v402_v60, %v502_v62 }
  0xc4   : > { %v814_v3 = vpack.c.bf16 %v526_v1, %v525_v63  ;;  %v834_v4 = vpack.c.bf16 %v534_v2, %v533_v0 }
  0xc6   : > { %886 = vst [vmem:[%s1034_s13 + $0x8] sm:$0xff] %v814_v3  }
  0xc7   : > { %890 = vst [vmem:[%s1034_s13 + $0x28] sm:$0xff] %v834_v4   ;;  %v422_v7 = vpop.f32.mrf.mxu2  ;;  %v442_v8 = vpop.f32.mrf.mxu3 }
  0xc8   : > { %vm474_vm14 = vcmp.ge.f32.partialorder %v422_v7, 0.0  ;;  %v510_v9 = vmul.f32 %v1023_v26, %v422_v7  ;;  %vm482_vm15 = vcmp.ge.f32.partialorder %v442_v8, 0.0  ;;  %v518_v10 = vmul.f32 %v1023_v26, %v442_v8  ;;  %v385_v11 = vpop.f32.mrf.mxu0  ;;  %v405_v12 = vpop.f32.mrf.mxu1 }
  0xc9   : > { %v495_v19 = vmul.f32 %v1023_v26, %v385_v11  ;;  %v503_v20 = vmul.f32 %v1023_v26, %v405_v12  ;;  %vm459_vm0 = vcmp.ge.f32.partialorder %v385_v11, 0.0  ;;  %vm467_vm1 = vcmp.ge.f32.partialorder %v405_v12, 0.0 }
  0xca   : > { %v542_v15 = vsel %vm474_vm14, %v422_v7, %v510_v9  ;;  %v550_v16 = vsel %vm482_vm15, %v442_v8, %v518_v10 }
  0xcb   : > { %v854_v17 = vpack.c.bf16 %v542_v15, %v541_v13  ;;  %v874_v18 = vpack.c.bf16 %v550_v16, %v549_v14  ;;  %v527_v28 = vsel %vm459_vm0, %v385_v11, %v495_v19  ;;  %v535_v29 = vsel %vm467_vm1, %v405_v12, %v503_v20 }
  0xcd   : > { %894 = vst [vmem:[%s1034_s13 + $0x48] sm:$0xff] %v854_v17  }
  0xce   : > { %898 = vst [vmem:[%s1034_s13 + $0x68] sm:$0xff] %v874_v18  }
  0xcf   : > { %v425_v21 = vpop.f32.mrf.mxu2  ;;  %v445_v22 = vpop.f32.mrf.mxu3 }
  0xd0   : > { %v387_v23 = vpop.f32.mrf.mxu0  ;;  %v407_v24 = vpop.f32.mrf.mxu1  ;;  %v511_v34 = vmul.f32 %v1023_v26, %v425_v21  ;;  %v519_v35 = vmul.f32 %v1023_v26, %v445_v22  ;;  %vm475_vm4 = vcmp.ge.f32.partialorder %v425_v21, 0.0  ;;  %vm483_vm5 = vcmp.ge.f32.partialorder %v445_v22, 0.0 }
  0xd1   : > { %vm460_vm2 = vcmp.ge.f32.partialorder %v387_v23, 0.0  ;;  %v496_v25 = vmul.f32 %v1023_v26, %v387_v23  ;;  %vm468_vm3 = vcmp.ge.f32.partialorder %v407_v24, 0.0  ;;  %v504_v27 = vmul.f32 %v1023_v26, %v407_v24 }
  0xd2   : > { %v543_v42 = vsel %vm475_vm4, %v425_v21, %v511_v34  ;;  %v551_v43 = vsel %vm483_vm5, %v445_v22, %v519_v35 }
  0xd3   : > { %v528_v30 = vsel %vm460_vm2, %v387_v23, %v496_v25  ;;  %v536_v31 = vsel %vm468_vm3, %v407_v24, %v504_v27 }
  0xd4   : > { %v819_v32 = vpack.c.bf16 %v528_v30, %v527_v28  ;;  %v839_v33 = vpack.c.bf16 %v536_v31, %v535_v29 }
  0xd6   : > { %887 = vst [vmem:[%s1034_s13 + $0x10] sm:$0xff] %v819_v32  }
  0xd7   : > { %891 = vst [vmem:[%s1034_s13 + $0x30] sm:$0xff] %v839_v33   ;;  %v427_v36 = vpop.f32.mrf.mxu2  ;;  %v447_v37 = vpop.f32.mrf.mxu3 }
  0xd8   : > { %vm476_vm6 = vcmp.ge.f32.partialorder %v427_v36, 0.0  ;;  %v512_v38 = vmul.f32 %v1023_v26, %v427_v36  ;;  %vm484_vm7 = vcmp.ge.f32.partialorder %v447_v37, 0.0  ;;  %v520_v39 = vmul.f32 %v1023_v26, %v447_v37  ;;  %v390_v40 = vpop.f32.mrf.mxu0  ;;  %v410_v41 = vpop.f32.mrf.mxu1 }
  0xd9   : > { %v497_v48 = vmul.f32 %v1023_v26, %v390_v40  ;;  %v505_v49 = vmul.f32 %v1023_v26, %v410_v41  ;;  %vm461_vm8 = vcmp.ge.f32.partialorder %v390_v40, 0.0  ;;  %vm469_vm9 = vcmp.ge.f32.partialorder %v410_v41, 0.0 }
  0xda   : > { %v544_v44 = vsel %vm476_vm6, %v427_v36, %v512_v38  ;;  %v552_v45 = vsel %vm484_vm7, %v447_v37, %v520_v39 }
  0xdb   : > { %v859_v46 = vpack.c.bf16 %v544_v44, %v543_v42  ;;  %v879_v47 = vpack.c.bf16 %v552_v45, %v551_v43  ;;  %v529_v56 = vsel %vm461_vm8, %v390_v40, %v497_v48  ;;  %v537_v57 = vsel %vm469_vm9, %v410_v41, %v505_v49 }
  0xdd   : > { %895 = vst [vmem:[%s1034_s13 + $0x50] sm:$0xff] %v859_v46  }
  0xde   : > { %899 = vst [vmem:[%s1034_s13 + $0x70] sm:$0xff] %v879_v47  }
  0xdf   : > { %v430_v50 = vpop.f32.mrf.mxu2  ;;  %v450_v51 = vpop.f32.mrf.mxu3 }
  0xe0   : > { %v392_v52 = vpop.f32.mrf.mxu0  ;;  %v412_v53 = vpop.f32.mrf.mxu1  ;;  %v513_v62 = vmul.f32 %v1023_v26, %v430_v50  ;;  %v521_v63 = vmul.f32 %v1023_v26, %v450_v51  ;;  %vm477_vm12 = vcmp.ge.f32.partialorder %v430_v50, 0.0  ;;  %vm485_vm13 = vcmp.ge.f32.partialorder %v450_v51, 0.0 }
  0xe1   : > { %vm462_vm10 = vcmp.ge.f32.partialorder %v392_v52, 0.0  ;;  %v498_v54 = vmul.f32 %v1023_v26, %v392_v52  ;;  %vm470_vm11 = vcmp.ge.f32.partialorder %v412_v53, 0.0  ;;  %v506_v55 = vmul.f32 %v1023_v26, %v412_v53 }
  0xe2   : > { %v545_v4 = vsel %vm477_vm12, %v430_v50, %v513_v62  ;;  %v553_v5 = vsel %vm485_vm13, %v450_v51, %v521_v63 }
  0xe3   : > { %v530_v58 = vsel %vm462_vm10, %v392_v52, %v498_v54  ;;  %v538_v59 = vsel %vm470_vm11, %v412_v53, %v506_v55 }
  0xe4   : > { %v824_v60 = vpack.c.bf16 %v530_v58, %v529_v56  ;;  %v844_v61 = vpack.c.bf16 %v538_v59, %v537_v57 }
  0xe6   : > { %888 = vst [vmem:[%s1034_s13 + $0x18] sm:$0xff] %v824_v60  }
  0xe7   : > { %892 = vst [vmem:[%s1034_s13 + $0x38] sm:$0xff] %v844_v61   ;;  %v432_v0 = vpop.f32.mrf.mxu2  ;;  %v452_v1 = vpop.f32.mrf.mxu3 }
  0xe8   : > { %vm478_vm14 = vcmp.ge.f32.partialorder %v432_v0, 0.0  ;;  %v514_v2 = vmul.f32 %v1023_v26, %v432_v0  ;;  %vm486_vm15 = vcmp.ge.f32.partialorder %v452_v1, 0.0  ;;  %v522_v3 = vmul.f32 %v1023_v26, %v452_v1 }
  0xea   : > { %v546_v6 = vsel %vm478_vm14, %v432_v0, %v514_v2  ;;  %v554_v7 = vsel %vm486_vm15, %v452_v1, %v522_v3 }
  0xeb   : > { %v864_v8 = vpack.c.bf16 %v546_v6, %v545_v4  ;;  %v884_v9 = vpack.c.bf16 %v554_v7, %v553_v5 }
  0xed   : > { %896 = vst [vmem:[%s1034_s13 + $0x58] sm:$0xff] %v864_v8  }
  0xee   : > { %900 = vst [vmem:[%s1034_s13 + $0x78] sm:$0xff] %v884_v9  }
  0xef PF: > { %s13_s12 = sadd.s32 1, %s940_s12  }
  0xf0   : > { %p10_p4 = scmp.ge.s32.totalorder %s13_s12, 4  }
  0xf2   :  { %12 = sbr.rel (!%p10_p4) target bundleno = 1 (0x1), region = 62 }

// kernel: bottleneck_ir_forward.3
= control target key start
LH: loop header
LB: loop body
LE: loop exit
PB: predicated region body
PF: predicated region fallthrough
CT: control target
= control target key end

     0   :  { %s2080_s12 = smov 0   ;;  %s2502_s0 = inlined_call_operand.vmem [shape: bf16[128,1280], index: 0, kind: input, shape index: {}]   ;;  %s2503_s1 = inlined_call_operand.vmem [shape: bf16[1280,128], index: 1, kind: input, shape index: {}]   ;;  %s2504_s2 = inlined_call_operand.vmem [shape: f32[1,128], index: 2, kind: input, shape index: {}]   ;;  %s2505_s3 = inlined_call_operand.vmem [shape: f32[128,128], index: 3, kind: output, shape index: {}]  }
   0x1 LB: > { %s1415_s13 = sadd.s32 4294967295, %s2058_s12   ;;  %p1419_p0 = scmp.ge.s32.totalorder %s2058_s12, 1  ;;  %s2058_s12 = sphi %s2080_s12, %s13_s12  }
   0x2   : > { %p139_p1 = scmp.lt.s32.totalorder %s2058_s12, 3 }
   0x4   : > { %p140_p2 = pnand %p1419_p0, %p139_p1 }
   0x5   : > { %s1420_s26 = sshll.u32 (!%p140_p2), %s1415_s13, 3 }
   0x6   : > { %143 = sbr.rel (%p140_p2) target bundleno = 336 (0x150), region = 32  ;;  %p165_p3 = scmp.lt.s32.totalorder (!%p140_p2), %s1420_s26, 15 }
   0xb   : > { %v1953_v0 = vld [vmem:[%s2503_s1 + $0x38] sm:$0xff]  ;;  %v1952_v2 = vld [vmem:[%s2503_s1 + $0x30] sm:$0xff]  ;;  %v1951_v4 = vld [vmem:[%s2503_s1 + $0x28] sm:$0xff]  ;;  %s2507_s26 = smov (!%p165_p3, %s1420_s26), 15 }
   0xc   : > { %v1961_v1 = vld [vmem:[%s2503_s1 + $0x78] sm:$0xff]  ;;  %2026 = vmatpush.bf16.msra.mxu2 %v1953_v0  ;;  %v1960_v3 = vld [vmem:[%s2503_s1 + $0x70] sm:$0xff]  ;;  %1061 = vmatpush.bf16.msra.mxu0 %v1953_v0  ;;  %v1959_v5 = vld [vmem:[%s2503_s1 + $0x68] sm:$0xff]  ;;  %s2042_s13 = smul.u32 40, %s2507_s26 }
   0xd   : > { %2034 = vmatpush.bf16.msra.mxu3 %v1961_v1  ;;  %1090 = vmatpush.bf16.msra.mxu1 %v1961_v1  ;;  %v1950_v6 = vld [vmem:[%s2503_s1 + $0x20] sm:$0xff]  ;;  %v1949_v8 = vld [vmem:[%s2503_s1 + $0x18] sm:$0xff]  ;;  %v1948_v10 = vld [vmem:[%s2503_s1 + $0x10] sm:$0xff] }
   0xe   : > { %v1958_v7 = vld [vmem:[%s2503_s1 + $0x60] sm:$0xff]  ;;  %v1957_v9 = vld [vmem:[%s2503_s1 + $0x58] sm:$0xff]  ;;  %v1956_v11 = vld [vmem:[%s2503_s1 + $0x50] sm:$0xff]  ;;  %s2136_s20 = scalar_lea.vmem %s2502_s0, %s2042_s13 }
   0xf   : > { %v1947_v12 = vld [vmem:[%s2503_s1 + $0x8] sm:$0xff]  ;;  %v1946_v14 = vld [vmem:[%s2503_s1] sm:$0xff]  ;;  %v1969_v20 = vld [vmem:[%s2503_s1 + $0xb8] sm:$0xff] }
  0x10   : > { %2027 = vmatpush.bf16.msra.mxu2 %v1952_v2  ;;  %1062 = vmatpush.bf16.msra.mxu0 %v1952_v2  ;;  %v1955_v13 = vld [vmem:[%s2503_s1 + $0x48] sm:$0xff]  ;;  %v1954_v15 = vld [vmem:[%s2503_s1 + $0x40] sm:$0xff]  ;;  %v1977_v23 = vld [vmem:[%s2503_s1 + $0xf8] sm:$0xff] }
  0x11   : > { %2035 = vmatpush.bf16.msra.mxu3 %v1960_v3  ;;  %1091 = vmatpush.bf16.msra.mxu1 %v1960_v3  ;;  %v1506_v16 = vld [vmem:[%s2136_s20 + $0xa0] sm:$0xf]  ;;  %v1931_v17 = vld [vmem:[%s2136_s20 + $0xc4] sm:$0xf0]  ;;  %v1926_v18 = vld [vmem:[%s2136_s20 + $0xa4] sm:$0xf] }
  0x12   : > { %v1508_v19 = vld [vmem:[%s2136_s20 + $0xc8] sm:$0xf0]  ;;  %v1426_v21 = vld [vmem:[%s2136_s20] sm:$0xf]  ;;  %v1911_v22 = vld [vmem:[%s2136_s20 + $0x24] sm:$0xf0]  ;;  %v1507_v26 = vor.u32 %v1931_v17, %v1506_v16 }
  0x13   : > { %v1906_v24 = vld [vmem:[%s2136_s20 + $0x4] sm:$0xf]  ;;  %v1428_v25 = vld [vmem:[%s2136_s20 + $0x28] sm:$0xf0]  ;;  %v1511_v27 = vor.u32 %v1926_v18, %v1508_v19  ;;  %v1427_v28 = vor.u32 %v1911_v22, %v1426_v21  ;;  %v1993_v29 = vld [vmem:[%s2503_s1 + $0x178] sm:$0xff] }
  0x14   : > { %2028 = vmatpush.bf16.msra.mxu2 %v1951_v4  ;;  %1063 = vmatpush.bf16.msra.mxu0 %v1951_v4  ;;  %v1985_v30 = vld [vmem:[%s2503_s1 + $0x138] sm:$0xff]  ;;  %v1431_v31 = vor.u32 %v1906_v24, %v1428_v25  ;;  %v1968_v32 = vld [vmem:[%s2503_s1 + $0xb0] sm:$0xff]  ;;  %v1967_v36 = vld [vmem:[%s2503_s1 + $0xa8] sm:$0xff] }
  0x15   : > { %2036 = vmatpush.bf16.msra.mxu3 %v1959_v5  ;;  %1092 = vmatpush.bf16.msra.mxu1 %v1959_v5  ;;  %v1976_v33 = vld [vmem:[%s2503_s1 + $0xf0] sm:$0xff]  ;;  %v1975_v37 = vld [vmem:[%s2503_s1 + $0xe8] sm:$0xff]  ;;  %v1966_v40 = vld [vmem:[%s2503_s1 + $0xa0] sm:$0xff] }
  0x16   : > { %v1992_v34 = vld [vmem:[%s2503_s1 + $0x170] sm:$0xff]  ;;  %v1991_v38 = vld [vmem:[%s2503_s1 + $0x168] sm:$0xff]  ;;  %v1974_v41 = vld [vmem:[%s2503_s1 + $0xe0] sm:$0xff] }
  0x17   : > { %v1984_v35 = vld [vmem:[%s2503_s1 + $0x130] sm:$0xff]  ;;  %v1983_v39 = vld [vmem:[%s2503_s1 + $0x128] sm:$0xff]  ;;  %v1982_v42 = vld [vmem:[%s2503_s1 + $0x120] sm:$0xff] }
  0x18   : > { %2029 = vmatpush.bf16.msra.mxu2 %v1950_v6  ;;  %1064 = vmatpush.bf16.msra.mxu0 %v1950_v6  ;;  %v1546_v43 = vld [vmem:[%s2136_s20 + $0xf0] sm:$0xf]  ;;  %v1941_v44 = vld [vmem:[%s2136_s20 + $0x114] sm:$0xf0]  ;;  %v1936_v45 = vld [vmem:[%s2136_s20 + $0xf4] sm:$0xf] }
  0x19   : > { %2037 = vmatpush.bf16.msra.mxu3 %v1958_v7  ;;  %1093 = vmatpush.bf16.msra.mxu1 %v1958_v7  ;;  %v1548_v46 = vld [vmem:[%s2136_s20 + $0x118] sm:$0xf0]  ;;  %v1990_v47 = vld [vmem:[%s2503_s1 + $0x160] sm:$0xff]  ;;  %v1466_v49 = vld [vmem:[%s2136_s20 + $0x50] sm:$0xf]  ;;  %v1547_v54 = vor.u32 %v1941_v44, %v1546_v43 }
  0x1a   : > { %v1965_v48 = vld [vmem:[%s2503_s1 + $0x98] sm:$0xff]  ;;  %v1916_v52 = vld [vmem:[%s2136_s20 + $0x54] sm:$0xf]  ;;  %v1551_v55 = vor.u32 %v1936_v45, %v1548_v46  ;;  %v1963_v0 = vld [vmem:[%s2503_s1 + $0x88] sm:$0xff] }
  0x1b   : > { %v1921_v50 = vld [vmem:[%s2136_s20 + $0x74] sm:$0xf0]  ;;  %v1468_v53 = vld [vmem:[%s2136_s20 + $0x78] sm:$0xf0]  ;;  %v1964_v60 = vld [vmem:[%s2503_s1 + $0x90] sm:$0xff] }
  0x1c   : > { %2030 = vmatpush.bf16.msra.mxu2 %v1949_v8  ;;  %1065 = vmatpush.bf16.msra.mxu0 %v1949_v8  ;;  %v1973_v51 = vld [vmem:[%s2503_s1 + $0xd8] sm:$0xff]  ;;  %v1467_v56 = vor.u32 %v1921_v50, %v1466_v49  ;;  %v1471_v59 = vor.u32 %v1916_v52, %v1468_v53  ;;  %v1972_v61 = vld [vmem:[%s2503_s1 + $0xd0] sm:$0xff]  ;;  %v1971_v1 = vld [vmem:[%s2503_s1 + $0xc8] sm:$0xff] }
  0x1d   : > { %2038 = vmatpush.bf16.msra.mxu3 %v1957_v9  ;;  %1094 = vmatpush.bf16.msra.mxu1 %v1957_v9  ;;  %v1989_v57 = vld [vmem:[%s2503_s1 + $0x158] sm:$0xff]  ;;  %v1988_v62 = vld [vmem:[%s2503_s1 + $0x150] sm:$0xff]  ;;  %v1987_v2 = vld [vmem:[%s2503_s1 + $0x148] sm:$0xff] }
  0x1e   : > { %v1981_v58 = vld [vmem:[%s2503_s1 + $0x118] sm:$0xff]  ;;  %v1980_v63 = vld [vmem:[%s2503_s1 + $0x110] sm:$0xff]  ;;  %v1979_v3 = vld [vmem:[%s2503_s1 + $0x108] sm:$0xff] }
  0x1f   : > { %v1962_v4 = vld [vmem:[%s2503_s1 + $0x80] sm:$0xff]  ;;  %v1434_v6 = vld [vmem:[%s2136_s20 + $0x8] sm:$0xf]  ;;  %v1912_v8 = vld [vmem:[%s2136_s20 + $0x2c] sm:$0xf0] }
  0x20   : > { %2031 = vmatpush.bf16.msra.mxu2 %v1948_v10  ;;  %1066 = vmatpush.bf16.msra.mxu0 %v1948_v10  ;;  %v1970_v5 = vld [vmem:[%s2503_s1 + $0xc0] sm:$0xff]  ;;  %v2001_v9 = vld [vmem:[%s2503_s1 + $0x1b8] sm:$0xff]  ;;  %v1908_v17 = vld [vmem:[%s2136_s20 + $0x14] sm:$0xf] }
  0x21   : > { %2039 = vmatpush.bf16.msra.mxu3 %v1956_v11  ;;  %1095 = vmatpush.bf16.msra.mxu1 %v1956_v11  ;;  %v1978_v7 = vld [vmem:[%s2503_s1 + $0x100] sm:$0xff]  ;;  %v2009_v10 = vld [vmem:[%s2503_s1 + $0x1f8] sm:$0xff]  ;;  %v1907_v11 = vld [vmem:[%s2136_s20 + $0xc] sm:$0xf] }
  0x22   : > { %v2025_v16 = vld [vmem:[%s2503_s1 + $0x278] sm:$0xff]  ;;  %v2008_v25 = vld [vmem:[%s2503_s1 + $0x1f0] sm:$0xff]  ;;  %v1918_v43 = vld [vmem:[%s2136_s20 + $0x64] sm:$0xf] }
  0x23   : > { %v1444_v18 = vld [vmem:[%s2136_s20 + $0x38] sm:$0xf0]  ;;  %v1484_v45 = vld [vmem:[%s2136_s20 + $0x88] sm:$0xf0]  ;;  %v2004_v53 = vld [vmem:[%s2503_s1 + $0x1d0] sm:$0xff] }
  0x24   : > { %2032 = vmatpush.bf16.msra.mxu2 %v1947_v12  ;;  %1067 = vmatpush.bf16.msra.mxu0 %v1947_v12  ;;  %v1436_v12 = vld [vmem:[%s2136_s20 + $0x30] sm:$0xf0]  ;;  %v2017_v19 = vld [vmem:[%s2503_s1 + $0x238] sm:$0xff]  ;;  %v1447_v24 = vor.u32 %v1908_v17, %v1444_v18  ;;  %v1487_v52 = vor.u32 %v1918_v43, %v1484_v45  ;;  %v1943_v17 = vld [vmem:[%s2136_s20 + $0x124] sm:$0xf0] }
  0x25   : > { %2040 = vmatpush.bf16.msra.mxu3 %v1955_v13  ;;  %1096 = vmatpush.bf16.msra.mxu1 %v1955_v13  ;;  %v1986_v13 = vld [vmem:[%s2503_s1 + $0x140] sm:$0xff]  ;;  %v1439_v21 = vor.u32 %v1907_v11, %v1436_v12  ;;  %v2005_v44 = vld [vmem:[%s2503_s1 + $0x1d8] sm:$0xff] }
  0x26   : > { %v2013_v46 = vld [vmem:[%s2503_s1 + $0x218] sm:$0xff]  ;;  %v2018_v11 = vld [vmem:[%s2503_s1 + $0x240] sm:$0xff] }
  0x27   : > { %v1554_v12 = vld [vmem:[%s2136_s20 + $0xf8] sm:$0xf]  ;;  %v1938_v18 = vld [vmem:[%s2136_s20 + $0x104] sm:$0xf]  ;;  %v1500_v43 = vld [vmem:[%s2136_s20 + $0x98] sm:$0xf0] }
  0x28   : > { %2033 = vmatpush.bf16.msra.mxu2 %v1946_v14  ;;  %1068 = vmatpush.bf16.msra.mxu0 %v1946_v14  ;;  %v1442_v14 = vld [vmem:[%s2136_s20 + $0x10] sm:$0xf] }
  0x29   : > { %2041 = vmatpush.bf16.msra.mxu3 %v1954_v15  ;;  %1097 = vmatpush.bf16.msra.mxu1 %v1954_v15  ;;  %v1913_v15 = vld [vmem:[%s2136_s20 + $0x34] sm:$0xf0] }
  0x2a   : > { %v1443_v22 = vor.u32 %v1913_v15, %v1442_v14  ;;  %v1937_v14 = vld [vmem:[%s2136_s20 + $0xfc] sm:$0xf]  ;;  %v1556_v15 = vld [vmem:[%s2136_s20 + $0x120] sm:$0xf0] }
  0x2b   : > { %1079 = vmatmul.bf16.vlgmr.msra.gmra.mxu2 %v1507_v26  ;;  %1069 = vmatmul.bf16.vlgmr.msra.gmra.mxu0 %v1427_v28  ;;  %v2016_v26 = vld [vmem:[%s2503_s1 + $0x230] sm:$0xff]  ;;  %v1999_v28 = vld [vmem:[%s2503_s1 + $0x1a8] sm:$0xff] }
  0x2c   : > { %1119 = vmatpush.bf16.msrb.mxu2 %v1969_v20  ;;  %1108 = vmatmul.bf16.vlgmr.msra.gmra.mxu3 %v1511_v27  ;;  %v1435_v20 = vor.u32 %v1912_v8, %v1434_v6  ;;  %v2024_v27 = vld [vmem:[%s2503_s1 + $0x270] sm:$0xff]  ;;  %v1524_v6 = vld [vmem:[%s2136_s20 + $0xd8] sm:$0xf0] }
  0x2d   : > { %1148 = vmatpush.bf16.msrb.mxu3 %v1977_v23  ;;  %1206 = vmatpush.bf16.msrb.mxu1 %v1993_v29  ;;  %v2000_v23 = vld [vmem:[%s2503_s1 + $0x1b0] sm:$0xff]  ;;  %v2007_v29 = vld [vmem:[%s2503_s1 + $0x1e8] sm:$0xff] }
  0x2e   : > { %1177 = vmatpush.bf16.msrb.mxu0 %v1985_v30  ;;  %1098 = vmatmul.bf16.vlgmr.msra.gmra.mxu1 %v1431_v31  ;;  %v2015_v30 = vld [vmem:[%s2503_s1 + $0x228] sm:$0xff] }
  0x2f   : > { %v2023_v31 = vld [vmem:[%s2503_s1 + $0x268] sm:$0xff] }
  0x30   : > { %1120 = vmatpush.bf16.msrb.mxu2 %v1968_v32  ;;  %v1998_v32 = vld [vmem:[%s2503_s1 + $0x1a0] sm:$0xff] }
  0x31   : > { %1149 = vmatpush.bf16.msrb.mxu3 %v1976_v33  ;;  %1207 = vmatpush.bf16.msrb.mxu1 %v1992_v34  ;;  %v2006_v33 = vld [vmem:[%s2503_s1 + $0x1e0] sm:$0xff] }
  0x32   : > { %1178 = vmatpush.bf16.msrb.mxu0 %v1984_v35  ;;  %v2014_v34 = vld [vmem:[%s2503_s1 + $0x220] sm:$0xff] }
  0x33   : > { %v2022_v35 = vld [vmem:[%s2503_s1 + $0x260] sm:$0xff] }
  0x34   : > { %1121 = vmatpush.bf16.msrb.mxu2 %v1967_v36  ;;  %v1474_v36 = vld [vmem:[%s2136_s20 + $0x58] sm:$0xf] }
  0x35   : > { %1150 = vmatpush.bf16.msrb.mxu3 %v1975_v37  ;;  %1208 = vmatpush.bf16.msrb.mxu1 %v1991_v38  ;;  %v1922_v37 = vld [vmem:[%s2136_s20 + $0x7c] sm:$0xf0]  ;;  %v1917_v38 = vld [vmem:[%s2136_s20 + $0x5c] sm:$0xf] }
  0x36   : > { %1179 = vmatpush.bf16.msrb.mxu0 %v1983_v39  ;;  %v1476_v39 = vld [vmem:[%s2136_s20 + $0x80] sm:$0xf0] }
  0x37   : > { %v1479_v49 = vor.u32 %v1917_v38, %v1476_v39  ;;  %v1919_v38 = vld [vmem:[%s2136_s20 + $0x6c] sm:$0xf]  ;;  %v1492_v39 = vld [vmem:[%s2136_s20 + $0x90] sm:$0xf0] }
  0x38   : > { %1122 = vmatpush.bf16.msrb.mxu2 %v1966_v40  ;;  %v1482_v40 = vld [vmem:[%s2136_s20 + $0x60] sm:$0xf]  ;;  %v1495_v45 = vor.u32 %v1919_v38, %v1492_v39 }
  0x39   : > { %1151 = vmatpush.bf16.msrb.mxu3 %v1974_v41  ;;  %1209 = vmatpush.bf16.msrb.mxu1 %v1990_v47  ;;  %v1997_v41 = vld [vmem:[%s2503_s1 + $0x198] sm:$0xff] }
  0x3a   : > { %1180 = vmatpush.bf16.msrb.mxu0 %v1982_v42  ;;  %v1923_v42 = vld [vmem:[%s2136_s20 + $0x84] sm:$0xf0]  ;;  %v2021_v47 = vld [vmem:[%s2503_s1 + $0x258] sm:$0xff] }
  0x3b   : > { %1084 = vmatmul.bf16.gmra.mxu2 %v1547_v54  ;;  %1074 = vmatmul.bf16.gmra.mxu0 %v1467_v56  ;;  %v1483_v50 = vor.u32 %v1923_v42, %v1482_v40  ;;  %v1995_v54 = vld [vmem:[%s2503_s1 + $0x188] sm:$0xff]  ;;  %v1498_v40 = vld [vmem:[%s2136_s20 + $0x70] sm:$0xf]  ;;  %v1920_v42 = vld [vmem:[%s2136_s20 + $0x74] sm:$0xf] }
  0x3c   : > { %1123 = vmatpush.bf16.msrb.mxu2 %v1965_v48  ;;  %1113 = vmatmul.bf16.gmra.mxu3 %v1551_v55  ;;  %v1475_v48 = vor.u32 %v1922_v37, %v1474_v36  ;;  %v2012_v55 = vld [vmem:[%s2503_s1 + $0x210] sm:$0xff]  ;;  %v2003_v56 = vld [vmem:[%s2503_s1 + $0x1c8] sm:$0xff] }
  0x3d   : > { %1152 = vmatpush.bf16.msrb.mxu3 %v1973_v51  ;;  %1210 = vmatpush.bf16.msrb.mxu1 %v1989_v57  ;;  %v1996_v51 = vld [vmem:[%s2503_s1 + $0x190] sm:$0xff]  ;;  %v1490_v36 = vld [vmem:[%s2136_s20 + $0x68] sm:$0xf] }
  0x3e   : > { %1181 = vmatpush.bf16.msrb.mxu0 %v1981_v58  ;;  %1103 = vmatmul.bf16.gmra.mxu1 %v1471_v59  ;;  %v2020_v57 = vld [vmem:[%s2503_s1 + $0x250] sm:$0xff]  ;;  %v2011_v58 = vld [vmem:[%s2503_s1 + $0x208] sm:$0xff] }
  0x3f   : > { %v2019_v59 = vld [vmem:[%s2503_s1 + $0x248] sm:$0xff]  ;;  %v1924_v37 = vld [vmem:[%s2136_s20 + $0x8c] sm:$0xf0] }
  0x40   : > { %1124 = vmatpush.bf16.msrb.mxu2 %v1964_v60  ;;  %v1994_v60 = vld [vmem:[%s2503_s1 + $0x180] sm:$0xff] }
  0x41   : > { %1153 = vmatpush.bf16.msrb.mxu3 %v1972_v61  ;;  %1211 = vmatpush.bf16.msrb.mxu1 %v1988_v62  ;;  %v2002_v61 = vld [vmem:[%s2503_s1 + $0x1c0] sm:$0xff] }
  0x42   : > { %1182 = vmatpush.bf16.msrb.mxu0 %v1980_v63  ;;  %v2010_v62 = vld [vmem:[%s2503_s1 + $0x200] sm:$0xff]  ;;  %v1514_v63 = vld [vmem:[%s2136_s20 + $0xa8] sm:$0xf] }
  0x44   : > { %1125 = vmatpush.bf16.msrb.mxu2 %v1963_v0  ;;  %v1932_v0 = vld [vmem:[%s2136_s20 + $0xcc] sm:$0xf0] }
  0x45   : > { %1154 = vmatpush.bf16.msrb.mxu3 %v1971_v1  ;;  %1212 = vmatpush.bf16.msrb.mxu1 %v1987_v2  ;;  %v1927_v1 = vld [vmem:[%s2136_s20 + $0xac] sm:$0xf]  ;;  %v1516_v2 = vld [vmem:[%s2136_s20 + $0xd0] sm:$0xf0] }
  0x46   : > { %1183 = vmatpush.bf16.msrb.mxu0 %v1979_v3  ;;  %v1522_v3 = vld [vmem:[%s2136_s20 + $0xb0] sm:$0xf]  ;;  %v1519_v8 = vor.u32 %v1927_v1, %v1516_v2 }
  0x48   : > { %1126 = vmatpush.bf16.msrb.mxu2 %v1962_v4  ;;  %v1933_v4 = vld [vmem:[%s2136_s20 + $0xd4] sm:$0xf0] }
  0x49   : > { %1155 = vmatpush.bf16.msrb.mxu3 %v1970_v5  ;;  %1213 = vmatpush.bf16.msrb.mxu1 %v1986_v13  ;;  %v1928_v5 = vld [vmem:[%s2136_s20 + $0xb4] sm:$0xf]  ;;  %v1942_v13 = vld [vmem:[%s2136_s20 + $0x11c] sm:$0xf0] }
  0x4a   : > { %1184 = vmatpush.bf16.msrb.mxu0 %v1978_v7  ;;  %v1515_v7 = vor.u32 %v1932_v0, %v1514_v63 }
  0x4b   : > { %1127 = vmatmul.bf16.vlgmr.msrb.gmra.mxu2 %v1435_v20  ;;  %v1555_v20 = vor.u32 %v1942_v13, %v1554_v12  ;;  %v1572_v12 = vld [vmem:[%s2136_s20 + $0x130] sm:$0xf0]  ;;  %v1578_v13 = vld [vmem:[%s2136_s20 + $0x110] sm:$0xf] }
  0x4c   : > { %1235 = vmatpush.bf16.msra.mxu2 %v2001_v9  ;;  %1156 = vmatmul.bf16.vlgmr.msrb.gmra.mxu3 %v1439_v21  ;;  %v1523_v9 = vor.u32 %v1933_v4, %v1522_v3  ;;  %v1559_v21 = vor.u32 %v1937_v14, %v1556_v15  ;;  %v1945_v14 = vld [vmem:[%s2136_s20 + $0x134] sm:$0xf0] }
  0x4d   : > { %1264 = vmatpush.bf16.msra.mxu3 %v2009_v10  ;;  %1322 = vmatpush.bf16.msra.mxu1 %v2025_v16  ;;  %v1527_v10 = vor.u32 %v1928_v5, %v1524_v6  ;;  %v1562_v16 = vld [vmem:[%s2136_s20 + $0x100] sm:$0xf] }
  0x4e   : > { %1293 = vmatpush.bf16.msra.mxu0 %v2017_v19  ;;  %1214 = vmatmul.bf16.vlgmr.msrb.gmra.mxu1 %v1447_v24  ;;  %v1564_v19 = vld [vmem:[%s2136_s20 + $0x128] sm:$0xf0]  ;;  %v1450_v24 = vld [vmem:[%s2136_s20 + $0x18] sm:$0xf] }
  0x4f   : > { %1185 = vmatmul.bf16.vlgmr.msrb.gmra.mxu0 %v1443_v22  ;;  %v1563_v22 = vor.u32 %v1943_v17, %v1562_v16  ;;  %v1940_v17 = vld [vmem:[%s2136_s20 + $0x114] sm:$0xf] }
  0x50   : > { %1236 = vmatpush.bf16.msra.mxu2 %v2000_v23  ;;  %v1567_v23 = vor.u32 %v1938_v18, %v1564_v19  ;;  %v1580_v18 = vld [vmem:[%s2136_s20 + $0x138] sm:$0xf0] }
  0x51   : > { %1265 = vmatpush.bf16.msra.mxu3 %v2008_v25  ;;  %1323 = vmatpush.bf16.msra.mxu1 %v2024_v27  ;;  %v1914_v25 = vld [vmem:[%s2136_s20 + $0x3c] sm:$0xf0]  ;;  %v1452_v27 = vld [vmem:[%s2136_s20 + $0x40] sm:$0xf0] }
  0x52   : > { %1294 = vmatpush.bf16.msra.mxu0 %v2016_v26  ;;  %v1909_v26 = vld [vmem:[%s2136_s20 + $0x1c] sm:$0xf] }
  0x54   : > { %1237 = vmatpush.bf16.msra.mxu2 %v1999_v28  ;;  %v1458_v28 = vld [vmem:[%s2136_s20 + $0x20] sm:$0xf] }
  0x55   : > { %1266 = vmatpush.bf16.msra.mxu3 %v2007_v29  ;;  %1324 = vmatpush.bf16.msra.mxu1 %v2023_v31  ;;  %v1915_v29 = vld [vmem:[%s2136_s20 + $0x44] sm:$0xf0]  ;;  %v1460_v31 = vld [vmem:[%s2136_s20 + $0x48] sm:$0xf0] }
  0x56   : > { %1295 = vmatpush.bf16.msra.mxu0 %v2015_v30  ;;  %v1910_v30 = vld [vmem:[%s2136_s20 + $0x24] sm:$0xf] }
  0x58   : > { %1238 = vmatpush.bf16.msra.mxu2 %v1998_v32  ;;  %v1451_v32 = vor.u32 %v1914_v25, %v1450_v24  ;;  %v1583_v25 = vor.u32 %v1940_v17, %v1580_v18 }
  0x59   : > { %1267 = vmatpush.bf16.msra.mxu3 %v2006_v33  ;;  %1325 = vmatpush.bf16.msra.mxu1 %v2022_v35  ;;  %v1455_v33 = vor.u32 %v1909_v26, %v1452_v27  ;;  %v1463_v35 = vor.u32 %v1910_v30, %v1460_v31 }
  0x5a   : > { %1296 = vmatpush.bf16.msra.mxu0 %v2014_v34  ;;  %v1459_v34 = vor.u32 %v1915_v29, %v1458_v28 }
  0x5b   : > { %1132 = vmatmul.bf16.gmra.mxu2 %v1475_v48  ;;  %v1530_v48 = vld [vmem:[%s2136_s20 + $0xb8] sm:$0xf] }
  0x5c   : > { %1239 = vmatpush.bf16.msra.mxu2 %v1997_v41  ;;  %1161 = vmatmul.bf16.gmra.mxu3 %v1479_v49  ;;  %v1925_v41 = vld [vmem:[%s2136_s20 + $0x94] sm:$0xf0]  ;;  %v1934_v49 = vld [vmem:[%s2136_s20 + $0xdc] sm:$0xf0] }
  0x5d   : > { %1268 = vmatpush.bf16.msra.mxu3 %v2005_v44  ;;  %1326 = vmatpush.bf16.msra.mxu1 %v2021_v47  ;;  %v1491_v44 = vor.u32 %v1924_v37, %v1490_v36  ;;  %v1503_v47 = vor.u32 %v1920_v42, %v1500_v43 }
  0x5e   : > { %1297 = vmatpush.bf16.msra.mxu0 %v2013_v46  ;;  %1219 = vmatmul.bf16.gmra.mxu1 %v1487_v52  ;;  %v1499_v46 = vor.u32 %v1925_v41, %v1498_v40  ;;  %v1538_v52 = vld [vmem:[%s2136_s20 + $0xc0] sm:$0xf] }
  0x5f   : > { %1190 = vmatmul.bf16.gmra.mxu0 %v1483_v50  ;;  %v1929_v50 = vld [vmem:[%s2136_s20 + $0xbc] sm:$0xf] }
  0x60   : > { %1240 = vmatpush.bf16.msra.mxu2 %v1996_v51  ;;  %v1532_v51 = vld [vmem:[%s2136_s20 + $0xe0] sm:$0xf0] }
  0x61   : > { %1269 = vmatpush.bf16.msra.mxu3 %v2004_v53  ;;  %1327 = vmatpush.bf16.msra.mxu1 %v2020_v57  ;;  %v1935_v53 = vld [vmem:[%s2136_s20 + $0xe4] sm:$0xf0]  ;;  %v1535_v57 = vor.u32 %v1929_v50, %v1532_v51 }
  0x62   : > { %1298 = vmatpush.bf16.msra.mxu0 %v2012_v55  ;;  %v1540_v55 = vld [vmem:[%s2136_s20 + $0xe8] sm:$0xf0] }
  0x64   : > { %1241 = vmatpush.bf16.msra.mxu2 %v1995_v54  ;;  %v1930_v54 = vld [vmem:[%s2136_s20 + $0xc4] sm:$0xf] }
  0x65   : > { %1270 = vmatpush.bf16.msra.mxu3 %v2003_v56  ;;  %1328 = vmatpush.bf16.msra.mxu1 %v2019_v59  ;;  %v1531_v56 = vor.u32 %v1934_v49, %v1530_v48  ;;  %v1539_v59 = vor.u32 %v1935_v53, %v1538_v52 }
  0x66   : > { %1299 = vmatpush.bf16.msra.mxu0 %v2011_v58  ;;  %v2051_v58 = vld [vmem:[%s2504_s2] ss:$0 sm:$0xff] }
  0x68   : > { %1242 = vmatpush.bf16.msra.mxu2 %v1994_v60 }
  0x69   : > { %1271 = vmatpush.bf16.msra.mxu3 %v2002_v61  ;;  %1329 = vmatpush.bf16.msra.mxu1 %v2018_v11  ;;  %v1543_v61 = vor.u32 %v1930_v54, %v1540_v55  ;;  %v1939_v11 = vld [vmem:[%s2136_s20 + $0x10c] sm:$0xf] }
  0x6a   : > { %1300 = vmatpush.bf16.msra.mxu0 %v2010_v62 }
  0x6b   : > { %1137 = vmatmul.bf16.gmra.mxu2 %v1515_v7 }
  0x6c   : > { %1166 = vmatmul.bf16.gmra.mxu3 %v1519_v8  ;;  %v1570_v8 = vld [vmem:[%s2136_s20 + $0x108] sm:$0xf] }
  0x6e   : > { %1224 = vmatmul.bf16.gmra.mxu1 %v1527_v10  ;;  %v1944_v10 = vld [vmem:[%s2136_s20 + $0x12c] sm:$0xf0]  ;;  %s1423_s20 = sshll.u32 %s2507_s26, 3 }
  0x6f   : > { %1195 = vmatmul.bf16.gmra.mxu0 %v1523_v9  ;;  %s2469_s11 = scalar_lea.vmem %s2505_s3, %s1423_s20 }
  0x7b   : > { %1142 = vmatmul.bf16.gmra.mxu2 %v1555_v20  ;;  %v1571_v20 = vor.u32 %v1944_v10, %v1570_v8 }
  0x7c   : > { %1171 = vmatmul.bf16.gmra.mxu3 %v1559_v21  ;;  %v1575_v21 = vor.u32 %v1939_v11, %v1572_v12 }
  0x7e   : > { %1229 = vmatmul.bf16.gmra.mxu1 %v1567_v23 }
  0x7f   : > { %1200 = vmatmul.bf16.gmra.mxu0 %v1563_v22  ;;  %v1579_v22 = vor.u32 %v1945_v14, %v1578_v13 }
  0x8b   : > { %1243 = vmatmul.bf16.vlgmr.msra.gmra.mxu2 %v1451_v32 }
  0x8c   : > { %1272 = vmatmul.bf16.vlgmr.msra.gmra.mxu3 %v1455_v33 }
  0x8e   : > { %1330 = vmatmul.bf16.vlgmr.msra.gmra.mxu1 %v1463_v35 }
  0x8f   : > { %1301 = vmatmul.bf16.vlgmr.msra.gmra.mxu0 %v1459_v34 }
  0x9b   : > { %1248 = vmatmul.bf16.gmra.mxu2 %v1491_v44 }
  0x9c   : > { %1277 = vmatmul.bf16.gmra.mxu3 %v1495_v45 }
  0x9e   : > { %1335 = vmatmul.bf16.gmra.mxu1 %v1503_v47 }
  0x9f   : > { %1306 = vmatmul.bf16.gmra.mxu0 %v1499_v46 }
  0xa8   : > { %v1070_v60 = vpop.f32.mrf.mxu0 }
  0xa9   : > { %v1071_v62 = vadd.f32 %v2051_v58, %v1070_v60 }
  0xab   : > { %v1099_v63 = vpop.f32.mrf.mxu1  ;;  %1253 = vmatmul.bf16.gmra.mxu2 %v1531_v56 }
  0xac   : > { %1282 = vmatmul.bf16.gmra.mxu3 %v1535_v57  ;;  %v2411_v0 = vadd.f32 %v1099_v63, %v1071_v62 }
  0xae   : > { %1340 = vmatmul.bf16.gmra.mxu1 %v1543_v61  ;;  %v1080_v1 = vpop.f32.mrf.mxu2 }
  0xaf   : > { %1311 = vmatmul.bf16.gmra.mxu0 %v1539_v59  ;;  %v1109_v2 = vpop.f32.mrf.mxu3  ;;  %v1081_v3 = vadd.f32 %v2051_v58, %v1080_v1 }
  0xb0   : > { %v1072_v5 = vpop.f32.mrf.mxu0 }
  0xb1   : > { %v2413_v4 = vadd.f32 %v1109_v2, %v1081_v3  ;;  %v1073_v6 = vadd.f32 %v2051_v58, %v1072_v5 }
  0xb3   : > { %v1101_v7 = vpop.f32.mrf.mxu1 }
  0xb4   : > { %v2416_v9 = vadd.f32 %v1101_v7, %v1073_v6 }
  0xb6   : > { %v1082_v15 = vpop.f32.mrf.mxu2 }
  0xb7   : > { %v1111_v16 = vpop.f32.mrf.mxu3  ;;  %v1083_v19 = vadd.f32 %v2051_v58, %v1082_v15 }
  0xb8   : > { %v1075_v24 = vpop.f32.mrf.mxu0 }
  0xb9   : > { %v2425_v23 = vadd.f32 %v1111_v16, %v1083_v19  ;;  %v1076_v26 = vadd.f32 %v2051_v58, %v1075_v24 }
  0xbb   : > { %v1104_v27 = vpop.f32.mrf.mxu1  ;;  %1258 = vmatmul.bf16.gmra.mxu2 %v1571_v20 }
  0xbc   : > { %1287 = vmatmul.bf16.gmra.mxu3 %v1575_v21  ;;  %v1105_v28 = vadd.f32 %v1104_v27, %v1076_v26 }
  0xbe   : > { %1345 = vmatmul.bf16.gmra.mxu1 %v1583_v25  ;;  %v1085_v29 = vpop.f32.mrf.mxu2 }
  0xbf   : > { %1316 = vmatmul.bf16.gmra.mxu0 %v1579_v22  ;;  %v1114_v30 = vpop.f32.mrf.mxu3  ;;  %v1086_v31 = vadd.f32 %v2051_v58, %v1085_v29 }
  0xc0   : > { %v1077_v33 = vpop.f32.mrf.mxu0 }
  0xc1   : > { %v2427_v32 = vadd.f32 %v1114_v30, %v1086_v31  ;;  %v1078_v34 = vadd.f32 %v2051_v58, %v1077_v33 }
  0xc3   : > { %v1106_v35 = vpop.f32.mrf.mxu1 }
  0xc4   : > { %v2429_v36 = vadd.f32 %v1106_v35, %v1078_v34 }
  0xc6   : > { %v1087_v37 = vpop.f32.mrf.mxu2 }
  0xc7   : > { %v1116_v38 = vpop.f32.mrf.mxu3  ;;  %v1088_v39 = vadd.f32 %v2051_v58, %v1087_v37 }
  0xc9   : > { %v2431_v40 = vadd.f32 %v1116_v38, %v1088_v39 }
  0xcb   : > { %v1215_v42 = vpop.f32.mrf.mxu1 }
  0xcc   : > { %v1186_v41 = vpop.f32.mrf.mxu0 }
  0xce   : > { %v1128_v43 = vpop.f32.mrf.mxu2 }
  0xcf   : > { %v1157_v44 = vpop.f32.mrf.mxu3  ;;  %v1129_v7 = vadd.f32 %v1128_v43, %v2411_v0 }
  0xd1   : > { %v1158_v11 = vadd.f32 %v1157_v44, %v1129_v7 }
  0xd3   : > { %v1217_v46 = vpop.f32.mrf.mxu1  ;;  %v1187_v14 = vadd.f32 %v1186_v41, %v1158_v11 }
  0xd4   : > { %v1188_v45 = vpop.f32.mrf.mxu0 }
  0xd5   : > { %v1216_v19 = vadd.f32 %v1215_v42, %v1187_v14 }
  0xd6   : > { %v1130_v47 = vpop.f32.mrf.mxu2 }
  0xd7   : > { %v1159_v48 = vpop.f32.mrf.mxu3  ;;  %v1131_v15 = vadd.f32 %v1130_v47, %v2416_v9 }
  0xd9   : > { %v1160_v18 = vadd.f32 %v1159_v48, %v1131_v15 }
  0xdb   : > { %v1220_v50 = vpop.f32.mrf.mxu1  ;;  %v1189_v22 = vadd.f32 %v1188_v45, %v1160_v18 }
  0xdc   : > { %v1191_v49 = vpop.f32.mrf.mxu0 }
  0xdd   : > { %v1218_v31 = vadd.f32 %v1217_v46, %v1189_v22 }
  0xde   : > { %v1133_v51 = vpop.f32.mrf.mxu2 }
  0xdf   : > { %v1162_v52 = vpop.f32.mrf.mxu3  ;;  %v1134_v24 = vadd.f32 %v1133_v51, %v1105_v28 }
  0xe1   : > { %v1163_v9 = vadd.f32 %v1162_v52, %v1134_v24 }
  0xe3   : > { %v2433_v54 = vpop.f32.mrf.mxu1  ;;  %v1192_v28 = vadd.f32 %v1191_v49, %v1163_v9 }
  0xe4   : > { %v1193_v53 = vpop.f32.mrf.mxu0 }
  0xe5   : > { %v1221_v45 = vadd.f32 %v1220_v50, %v1192_v28 }
  0xe6   : > { %v1135_v55 = vpop.f32.mrf.mxu2 }
  0xe7   : > { %v1164_v56 = vpop.f32.mrf.mxu3  ;;  %v1136_v37 = vadd.f32 %v1135_v55, %v2429_v36 }
  0xe9   : > { %v1165_v43 = vadd.f32 %v1164_v56, %v1136_v37 }
  0xeb   : > { %v2437_v58 = vpop.f32.mrf.mxu1  ;;  %v1194_v51 = vadd.f32 %v1193_v53, %v1165_v43 }
  0xec   : > { %v2435_v57 = vpop.f32.mrf.mxu0 }
  0xed   : > { %v1223_v15 = vadd.f32 %v2433_v54, %v1194_v51 }
  0xee   : > { %v1138_v59 = vpop.f32.mrf.mxu2 }
  0xef   : > { %v1167_v60 = vpop.f32.mrf.mxu3  ;;  %v1139_v52 = vadd.f32 %v1138_v59, %v2413_v4 }
  0xf1   : > { %v1168_v36 = vadd.f32 %v1167_v60, %v1139_v52 }
  0xf3   : > { %v2441_v62 = vpop.f32.mrf.mxu1 }
  0xf4   : > { %v2439_v61 = vpop.f32.mrf.mxu0 }
  0xf6   : > { %v2443_v63 = vpop.f32.mrf.mxu2 }
  0xf7   : > { %v2445_v1 = vpop.f32.mrf.mxu3  ;;  %v1141_v53 = vadd.f32 %v2443_v63, %v2425_v23 }
  0xfb   : > { %v2449_v3 = vpop.f32.mrf.mxu1 }
  0xfc   : > { %v2447_v2 = vpop.f32.mrf.mxu0 }
  0xfe   : > { %v2451_v5 = vpop.f32.mrf.mxu2 }
  0xff   : > { %v2453_v6 = vpop.f32.mrf.mxu3 }
 0x103   : > { %v2458_v10 = vpop.f32.mrf.mxu1 }
 0x104   : > { %v2456_v8 = vpop.f32.mrf.mxu0 }
 0x106   : > { %v2460_v12 = vpop.f32.mrf.mxu2 }
 0x107   : > { %v2462_v13 = vpop.f32.mrf.mxu3 }
 0x10b   : > { %v1331_v17 = vpop.f32.mrf.mxu1 }
 0x10c   : > { %v1302_v16 = vpop.f32.mrf.mxu0 }
 0x10e   : > { %v1244_v20 = vpop.f32.mrf.mxu2 }
 0x10f   : > { %v1273_v21 = vpop.f32.mrf.mxu3  ;;  %v1245_v0 = vadd.f32 %v1244_v20, %v1216_v19  ;;  %v1170_v19 = vadd.f32 %v2445_v1, %v1141_v53 }
 0x111   : > { %v1274_v25 = vadd.f32 %v1273_v21, %v1245_v0  ;;  %v1199_v24 = vadd.f32 %v2439_v61, %v1170_v19  ;;  %v1146_v61 = vadd.f32 %v2460_v12, %v2431_v40 }
 0x113   : > { %v1333_v27 = vpop.f32.mrf.mxu1  ;;  %v1303_v29 = vadd.f32 %v1302_v16, %v1274_v25 }
 0x114   : > { %v1304_v26 = vpop.f32.mrf.mxu0 }
 0x115   : > { %v1332_v30 = vadd.f32 %v1331_v17, %v1303_v29  ;;  %v1197_v17 = vadd.f32 %v2435_v57, %v1168_v36  ;;  %v1144_v57 = vadd.f32 %v2451_v5, %v2427_v32 }
 0x116   : > { %v1246_v33 = vpop.f32.mrf.mxu2 }
 0x117   : > { %v1275_v34 = vpop.f32.mrf.mxu3  ;;  %1351 = vst [vmem:[%s2469_s11] sm:$0xff] %v1332_v30  ;;  %v1247_v35 = vadd.f32 %v1246_v33, %v1218_v31  ;;  %v1226_v54 = vadd.f32 %v2437_v58, %v1197_v17  ;;  %v1173_v25 = vadd.f32 %v2453_v6, %v1144_v57  ;;  %v1175_v6 = vadd.f32 %v2462_v13, %v1146_v61 }
 0x119   : > { %v1276_v38 = vadd.f32 %v1275_v34, %v1247_v35  ;;  %v1202_v31 = vadd.f32 %v2447_v2, %v1173_v25 }
 0x11b   : > { %v1336_v41 = vpop.f32.mrf.mxu1  ;;  %v1305_v42 = vadd.f32 %v1304_v26, %v1276_v38  ;;  %v1231_v34 = vadd.f32 %v2449_v3, %v1202_v31  ;;  %v1204_v38 = vadd.f32 %v2456_v8, %v1175_v6 }
 0x11c   : > { %v1307_v39 = vpop.f32.mrf.mxu0 }
 0x11d   : > { %v1334_v44 = vadd.f32 %v1333_v27, %v1305_v42  ;;  %v1228_v27 = vadd.f32 %v2441_v62, %v1199_v24  ;;  %v1233_v12 = vadd.f32 %v2458_v10, %v1204_v38 }
 0x11e   : > { %v1249_v47 = vpop.f32.mrf.mxu2 }
 0x11f   : > { %v1278_v48 = vpop.f32.mrf.mxu3  ;;  %1352 = vst [vmem:[%s2469_s11 + $0x8] sm:$0xff] %v1334_v44  ;;  %v1250_v46 = vadd.f32 %v1249_v47, %v1221_v45 }
 0x121   : > { %v1279_v7 = vadd.f32 %v1278_v48, %v1250_v46 }
 0x123   : > { %v1308_v49 = vadd.f32 %v1307_v39, %v1279_v7  ;;  %v1338_v14 = vpop.f32.mrf.mxu1 }
 0x124   : > { %v1309_v11 = vpop.f32.mrf.mxu0 }
 0x125   : > { %v1337_v55 = vadd.f32 %v1336_v41, %v1308_v49 }
 0x126   : > { %v1251_v56 = vpop.f32.mrf.mxu2 }
 0x127   : > { %v1280_v16 = vpop.f32.mrf.mxu3  ;;  %1353 = vst [vmem:[%s2469_s11 + $0x10] sm:$0xff] %v1337_v55  ;;  %v1252_v50 = vadd.f32 %v1251_v56, %v1223_v15 }
 0x129   : > { %v1281_v18 = vadd.f32 %v1280_v16, %v1252_v50 }
 0x12b   : > { %v1310_v4 = vadd.f32 %v1309_v11, %v1281_v18  ;;  %v1341_v60 = vpop.f32.mrf.mxu1 }
 0x12c   : > { %v1312_v59 = vpop.f32.mrf.mxu0 }
 0x12d   : > { %v1339_v20 = vadd.f32 %v1338_v14, %v1310_v4 }
 0x12e   : > { %v1254_v21 = vpop.f32.mrf.mxu2 }
 0x12f   : > { %v1283_v0 = vpop.f32.mrf.mxu3  ;;  %1354 = vst [vmem:[%s2469_s11 + $0x18] sm:$0xff] %v1339_v20  ;;  %v1255_v22 = vadd.f32 %v1254_v21, %v1226_v54 }
 0x131   : > { %v1284_v23 = vadd.f32 %v1283_v0, %v1255_v22 }
 0x133   : > { %v1313_v63 = vadd.f32 %v1312_v59, %v1284_v23  ;;  %v1343_v30 = vpop.f32.mrf.mxu1 }
 0x134   : > { %v1314_v1 = vpop.f32.mrf.mxu0 }
 0x135   : > { %v1342_v26 = vadd.f32 %v1341_v60, %v1313_v63 }
 0x136   : > { %v1256_v29 = vpop.f32.mrf.mxu2 }
 0x137   : > { %v1285_v58 = vpop.f32.mrf.mxu3  ;;  %1355 = vst [vmem:[%s2469_s11 + $0x20] sm:$0xff] %v1342_v26  ;;  %v1257_v9 = vadd.f32 %v1256_v29, %v1228_v27 }
 0x139   : > { %v1286_v32 = vadd.f32 %v1285_v58, %v1257_v9 }
 0x13b   : > { %v1315_v5 = vadd.f32 %v1314_v1, %v1286_v32  ;;  %v1346_v39 = vpop.f32.mrf.mxu1 }
 0x13c   : > { %v1317_v37 = vpop.f32.mrf.mxu0 }
 0x13d   : > { %v1344_v33 = vadd.f32 %v1343_v30, %v1315_v5 }
 0x13e   : > { %v1259_v35 = vpop.f32.mrf.mxu2 }
 0x13f   : > { %v1288_v62 = vpop.f32.mrf.mxu3  ;;  %1356 = vst [vmem:[%s2469_s11 + $0x28] sm:$0xff] %v1344_v33  ;;  %v1260_v28 = vadd.f32 %v1259_v35, %v1231_v34 }
 0x141   : > { %v1289_v2 = vadd.f32 %v1288_v62, %v1260_v28 }
 0x143   : > { %v1318_v41 = vadd.f32 %v1317_v37, %v1289_v2  ;;  %v1348_v47 = vpop.f32.mrf.mxu1 }
 0x144   : > { %v1319_v3 = vpop.f32.mrf.mxu0 }
 0x145   : > { %v1347_v40 = vadd.f32 %v1346_v39, %v1318_v41 }
 0x146   : > { %v1261_v42 = vpop.f32.mrf.mxu2 }
 0x147   : > { %1357 = vst [vmem:[%s2469_s11 + $0x30] sm:$0xff] %v1347_v40  ;;  %v1262_v13 = vadd.f32 %v1261_v42, %v1233_v12  ;;  %v1290_v43 = vpop.f32.mrf.mxu3 }
 0x149   : > { %v1291_v44 = vadd.f32 %v1290_v43, %v1262_v13 }
 0x14b   : > { %v1320_v45 = vadd.f32 %v1319_v3, %v1291_v44 }
 0x14d   : > { %v1349_v48 = vadd.f32 %v1348_v47, %v1320_v45 }
 0x14f   : > { %1358 = vst [vmem:[%s2469_s11 + $0x38] sm:$0xff] %v1349_v48 }
 0x150 PF: > { %s13_s12 = sadd.s32 1, %s2058_s12  }
 0x151   : > { %p10_p4 = scmp.ge.s32.totalorder %s13_s12, 4  }
 0x153   :  { %12 = sbr.rel (!%p10_p4) target bundleno = 1 (0x1), region = 62 }

</bundles_post_ra>
